<compile_context>
chip_gen: v5e
topology: v5e:2x2
jax: 0.10.0
libtpu: 0.0.40
codegen_flags: <defaults>
</compile_context>

<pallas_src>
import functools

import jax
import jax.numpy as jnp
from jax.experimental import pallas as pl
from jax.experimental.pallas import tpu as pltpu

KH = KW = 3  # 3x3 conv, padding=1 (SAME)


def _conv3x3_relu_kernel(x_ref, wt_ref, b_ref, o_ref, *, img_h):
    """Whole-batch conv3x3 + bias + ReLU as 3 accumulated MXU dots.

    x_ref : (N*H, W*Cin)        f32 NHWC rows, flattened; no spatial padding
    wt_ref: (KH, W*Cin, W*Cout) bf16 Toeplitz weights, horizontal pad folded in
    b_ref : (1, W*Cout)         f32 bias tiled along W (lane-dense)
    o_ref : (N*H, W*Cout)       f32 lane-dense output slab
    """
    rows, wcin = x_ref.shape
    wcout = o_ref.shape[1]

    x = x_ref[...]                                            # (rows, W*Cin)

    # Row-within-image index for every flattened (n*H + h) row.
    hh = jax.lax.broadcasted_iota(jnp.int32, (rows, wcin), 0) % img_h

    # Vertical taps via sublane roll + iota mask (no zero-row concats, no
    # padded intermediate).  Horizontal taps / SAME padding live in wt_ref.
    # pltpu.roll follows jnp.roll semantics; shift rows-1 == shift -1.
    x_up = jnp.where(hh > 0, pltpu.roll(x, 1, axis=0), 0.0)              # row h-1
    x_dn = jnp.where(hh < img_h - 1, pltpu.roll(x, rows - 1, axis=0), 0.0)  # row h+1

    acc = jnp.zeros((rows, wcout), jnp.float32)
    for kh, part in enumerate((x_up, x, x_dn)):               # kh = 0, 1, 2
        lhs = part.astype(wt_ref.dtype)                       # bf16 MXU operands
        acc = acc + jnp.dot(lhs, wt_ref[kh],
                            preferred_element_type=jnp.float32)

    acc = acc + b_ref[...]                                    # broadcast (1, W*Cout)
    o_ref[...] = jnp.maximum(acc, 0.0).astype(o_ref.dtype)    # ReLU, full-width vst


def _build_toeplitz_weight(w_hwio, w_out, dtype=jnp.bfloat16):
    """(KH,KW,Cin,Cout) conv weights -> (KH, W*Cin, W*Cout) per-vertical-tap
    matrices with the horizontal SAME padding folded in (taps that read an
    out-of-range input column are zero), so
        sum_kh row_shift_kh(x) @ toeplitz[kh] == conv3x3(x, pad=1)
    with output lanes laid out as w*Cout + cout (lane-dense)."""
    kh_, kw_, cin, cout = w_hwio.shape
    pad = kw_ // 2
    wi = jnp.arange(w_out)[:, None]           # input column index
    wo = jnp.arange(w_out)[None, :]           # output column index
    tap = wi - wo + pad                       # kw tap for this (wi, wo) pair
    valid = (tap >= 0) & (tap < kw_)          # horizontal SAME pad folded here
    tap_c = jnp.clip(tap, 0, kw_ - 1)
    g = w_hwio[:, tap_c, :, :]                                # (KH, Win, Wout, Cin, Cout)
    g = jnp.where(valid[None, :, :, None, None], g, 0.0)
    g = jnp.transpose(g, (0, 1, 3, 2, 4))                     # (KH, Win, Cin, Wout, Cout)
    return g.reshape(kh_, w_out * cin, w_out * cout).astype(dtype)


@jax.jit
def _conv2d_relu_pallas(x_nchw, wt_toe, b_row):
    """Conv2d(Cin,Cout,3,padding=1) + ReLU.  Input/output are NCHW float32."""
    n, cin, h, w = x_nchw.shape
    kh_, wcin, wcout = wt_toe.shape
    cout = wcout // w
    rows = n * h

    # NCHW -> (N*H, W*Cin) glue; allow_input_fusion lets XLA fuse this
    # transpose+reshape into the pallas_call operand.
    x = jnp.transpose(x_nchw, (0, 2, 3, 1)).reshape(rows, w * cin)
    x = x.astype(jnp.float32)

    kernel = functools.partial(_conv3x3_relu_kernel, img_h=h)

    cost = pl.CostEstimate(
        flops=2 * rows * (kh_ * wcin) * wcout,
        transcendentals=0,
        bytes_accessed=(x.size * 4
                        + wt_toe.size * wt_toe.dtype.itemsize
                        + b_row.size * 4
                        + rows * wcout * 4),
    )

    out2d = pl.pallas_call(
        kernel,
        out_shape=jax.ShapeDtypeStruct((rows, wcout), jnp.float32),
        grid_spec=pltpu.PrefetchScalarGridSpec(
            num_scalar_prefetch=0,
            # Whole batch in a single invocation: at N*H=32 rows the problem
            # easily fits VMEM and per-grid-step overhead (~0.35 us) would
            # dominate.  Do NOT split N=2 across the v7x TensorCores at this
            # size; add a "parallel" row-block axis only when N*H >= several
            # hundred rows (weight index_map kept constant so it stays resident).
            grid=(1,),
            in_specs=[
                pl.BlockSpec((rows, w * cin), lambda i: (0, 0)),
                pl.BlockSpec((kh_, wcin, wcout), lambda i: (0, 0, 0)),
                pl.BlockSpec((1, wcout), lambda i: (0, 0)),
            ],
            out_specs=pl.BlockSpec((rows, wcout), lambda i: (0, 0)),
        ),
        compiler_params=pltpu.CompilerParams(
            dimension_semantics=("arbitrary",),
            allow_input_fusion=[True, False, False],
        ),
        cost_estimate=cost,
    )(x, wt_toe, b_row)

    # (N*H, W*Cout) -> NCHW.  The reshape is a free bitcast; only the final
    # transpose is a real XLA op.  A 4-D (N,H,W,Cout) out block would force
    # 8-lane masked in-kernel stores, so the lane-dense 2-D output is kept.
    return jnp.transpose(out2d.reshape(n, h, w, cout), (0, 3, 1, 2))


class SubModuleWrapper:
    """JAX port of pipeline.sub_module_wrapper.SubModuleWrapper.

    The wrapped submodule is Conv2d(Cin,Cout,3,pad=1)+ReLU, run as a Pallas
    TPU kernel.  forward() saves a detached copy of the input and returns the
    submodule output (equivalent to torch's no_grad forward).
    """

    def __init__(self, weight_hwio, bias):
        self.weight = weight_hwio
        self.bias = bias
        # NOTE: cache is keyed on spatial W only; if weight/bias are updated
        # (training / checkpoint reload) call _clear_packed(), otherwise stale
        # Toeplitz weights would be served.
        self._packed = {}
        self.first_activations = []

    def del_activations(self):
        self.first_activations = []

    def _clear_packed(self):
        self._packed = {}

    def _get_packed(self, w_spatial):
        # One-time weight packing per spatial width (like module.to(device)).
        if w_spatial not in self._packed:
            _, _, cin, cout = self.weight.shape
            # VMEM guard: the Toeplitz weight grows O(W^2); keep well below the
            # v7x scoped-VMEM default (32 MiB, 64 MiB physical) including
            # double-buffer headroom before using the single-block scheme.
            wt_bytes = KH * (w_spatial * cin) * (w_spatial * cout) * 2  # bf16
            if wt_bytes > (8 << 20):
                # TODO(synk): switch to per-column-block accumulation (O(W)
                # resident weight) before scaling W this far.
                raise NotImplementedError(
                    "Toeplitz weight too large for the single-block kernel")
            wt = _build_toeplitz_weight(
                self.weight.astype(jnp.float32), w_spatial)
            b = jnp.tile(self.bias.astype(jnp.float32),
                         w_spatial).reshape(1, w_spatial * cout)
            self._packed[w_spatial] = (wt, b)
        return self._packed[w_spatial]

    def forward(self, x):
        # torch: input.clone().detach_()  ->  stop_gradient copy
        self.first_activations.append(jax.lax.stop_gradient(x))
        wt_toe, b_row = self._get_packed(x.shape[3])
        # torch: autograd.no_grad() forward -> plain inference call
        return _conv2d_relu_pallas(x, wt_toe, b_row)

    __call__ = forward

    # TODO(synk): backward() (re-forward on saved activation + VJP w.r.t. the
    # input) is not implemented; only the forward pass is required here.


if __name__ == "__main__":
    # Small shapes consistent with the module: N=2, Cin=4, H=W=16, Cout=8.
    key = jax.random.PRNGKey(0)
    kx, kwgt, kb = jax.random.split(key, 3)

    N, Cin, H, W, Cout = 2, 4, 16, 16, 8
    x = jax.random.normal(kx, (N, Cin, H, W), dtype=jnp.float32)
    # Deterministic parameter init (synthetic, not a checkpoint load).
    w_hwio = 0.1 * jax.random.normal(kwgt, (KH, KW, Cin, Cout), dtype=jnp.float32)
    bias = 0.05 * jax.random.normal(kb, (Cout,), dtype=jnp.float32)

    wrapper = SubModuleWrapper(w_hwio, bias)
    out = jax.block_until_ready(wrapper(x))

    # Sanity check against a pure-JAX reference conv (same semantics as
    # torch.nn.Conv2d(padding=1) + ReLU).
    ref = jax.lax.conv_general_dilated(
        x, w_hwio, window_strides=(1, 1), padding="SAME",
        dimension_numbers=("NCHW", "HWIO", "NCHW"))
    ref = jnp.maximum(ref + bias.reshape(1, Cout, 1, 1), 0.0)
    assert out.shape == (N, Cout, H, W)
    # bf16 Toeplitz weights / bf16 MXU operands -> looser tolerance than f32.
    assert jnp.allclose(out, ref, atol=3e-2, rtol=3e-2), "mismatch vs reference"
    assert len(wrapper.first_activations) == 1

    print("KERNEL_OK")
</pallas_src>

<mosaic_0001>
module attributes {stable_mosaic.version = 11 : i64} {
  func.func @_conv3x3_relu_kernel(%arg0: i32, %arg1: memref<32x64xf32, #tpu.memory_space<vmem>>, %arg2: memref<3x64x128xbf16, #tpu.memory_space<vmem>>, %arg3: memref<1x128xf32, #tpu.memory_space<vmem>>, %arg4: memref<32x128xf32, #tpu.memory_space<vmem>>) attributes {dimension_semantics = [#tpu.dimension_semantics<arbitrary>], iteration_bounds = array<i64: 1>, scalar_prefetch = 0 : i64, scratch_operands = 0 : i64, tpu.core_type = #tpu.core_type<tc>, window_params = [{pipeline_mode = #tpu.pipeline_mode<synchronous>, transform_indices = @transform_0, window_bounds = array<i64: 32, 64>}, {pipeline_mode = #tpu.pipeline_mode<synchronous>, transform_indices = @transform_1, window_bounds = array<i64: 3, 64, 128>}, {pipeline_mode = #tpu.pipeline_mode<synchronous>, transform_indices = @transform_2, window_bounds = array<i64: 1, 128>}, {pipeline_mode = #tpu.pipeline_mode<synchronous>, transform_indices = @transform_3, window_bounds = array<i64: 32, 128>}]} {
    %c0 = arith.constant 0 : index
    %c0_0 = arith.constant 0 : index
    %0 = vector.load %arg1[%c0, %c0_0] : memref<32x64xf32, #tpu.memory_space<vmem>>, vector<32x64xf32>
    %1 = tpu.iota {dimensions = array<i32: 0>} : vector<32x64xi32>
    %c16_i32 = arith.constant 16 : i32
    %c0_i32 = arith.constant 0 : i32
    %2 = arith.cmpi eq, %c16_i32, %c0_i32 : i32
    %c1_i32 = arith.constant 1 : i32
    %3 = arith.select %2, %c1_i32, %c16_i32 : i32
    %4 = vector.broadcast %3 : i32 to vector<32x64xi32>
    %5 = arith.remsi %1, %4 : vector<32x64xi32>
    %c0_i32_1 = arith.constant 0 : i32
    %6 = vector.broadcast %c0_i32_1 : i32 to vector<32x64xi32>
    %7 = arith.cmpi ne, %5, %6 : vector<32x64xi32>
    %c0_i32_2 = arith.constant 0 : i32
    %8 = vector.broadcast %c0_i32_2 : i32 to vector<32x64xi32>
    %9 = arith.cmpi slt, %5, %8 : vector<32x64xi32>
    %c0_i32_3 = arith.constant 0 : i32
    %10 = arith.cmpi slt, %3, %c0_i32_3 : i32
    %11 = vector.broadcast %10 : i1 to vector<32x64xi1>
    %12 = vector.broadcast %11 : vector<32x64xi1> to vector<32x64xi1>
    %13 = arith.xori %9, %12 : vector<32x64xi1>
    %14 = arith.andi %13, %7 : vector<32x64xi1>
    %15 = vector.broadcast %3 : i32 to vector<32x64xi32>
    %16 = arith.addi %5, %15 : vector<32x64xi32>
    %17 = arith.select %14, %16, %5 : vector<32x64xi1>, vector<32x64xi32>
    %c0_i32_4 = arith.constant 0 : i32
    %18 = vector.broadcast %c0_i32_4 : i32 to vector<32x64xi32>
    %19 = arith.cmpi sgt, %17, %18 : vector<32x64xi32>
    %c1_i32_5 = arith.constant 1 : i32
    %20 = tpu.dynamic_rotate %0 by %c1_i32_5 dim 0 : vector<32x64xf32>, i32 -> vector<32x64xf32>
    %cst = arith.constant 0.000000e+00 : f32
    %21 = vector.broadcast %cst : f32 to vector<32x64xf32>
    %22 = arith.select %19, %20, %21 : vector<32x64xi1>, vector<32x64xf32>
    %c15_i32 = arith.constant 15 : i32
    %23 = vector.broadcast %c15_i32 : i32 to vector<32x64xi32>
    %24 = arith.cmpi slt, %17, %23 : vector<32x64xi32>
    %c31_i32 = arith.constant 31 : i32
    %25 = tpu.dynamic_rotate %0 by %c31_i32 dim 0 : vector<32x64xf32>, i32 -> vector<32x64xf32>
    %cst_6 = arith.constant 0.000000e+00 : f32
    %26 = vector.broadcast %cst_6 : f32 to vector<32x64xf32>
    %27 = arith.select %24, %25, %26 : vector<32x64xi1>, vector<32x64xf32>
    %cst_7 = arith.constant 0.000000e+00 : f32
    %28 = vector.broadcast %cst_7 : f32 to vector<32x128xf32>
    %29 = arith.truncf %22 : vector<32x64xf32> to vector<32x64xbf16>
    %c0_8 = arith.constant 0 : index
    %c0_9 = arith.constant 0 : index
    %c0_10 = arith.constant 0 : index
    %30 = vector.load %arg2[%c0_8, %c0_9, %c0_10] : memref<3x64x128xbf16, #tpu.memory_space<vmem>>, vector<1x64x128xbf16>
    %31 = vector.shape_cast %30 : vector<1x64x128xbf16> to vector<64x128xbf16>
    %cst_11 = arith.constant dense<0.000000e+00> : vector<32x128xf32>
    %32 = tpu.matmul %29, %31, %cst_11 {dimension_numbers = #tpu.dot_dimension_numbers<[1], [0], [0], [1], [0, 0, 1, 1], [], []>} : vector<32x64xbf16>, vector<64x128xbf16>, vector<32x128xf32> -> vector<32x128xf32>
    %33 = arith.addf %28, %32 : vector<32x128xf32>
    %34 = arith.truncf %0 : vector<32x64xf32> to vector<32x64xbf16>
    %c1 = arith.constant 1 : index
    %c0_12 = arith.constant 0 : index
    %c0_13 = arith.constant 0 : index
    %35 = vector.load %arg2[%c1, %c0_12, %c0_13] : memref<3x64x128xbf16, #tpu.memory_space<vmem>>, vector<1x64x128xbf16>
    %36 = vector.shape_cast %35 : vector<1x64x128xbf16> to vector<64x128xbf16>
    %cst_14 = arith.constant dense<0.000000e+00> : vector<32x128xf32>
    %37 = tpu.matmul %34, %36, %cst_14 {dimension_numbers = #tpu.dot_dimension_numbers<[1], [0], [0], [1], [0, 0, 1, 1], [], []>} : vector<32x64xbf16>, vector<64x128xbf16>, vector<32x128xf32> -> vector<32x128xf32>
    %38 = arith.addf %33, %37 : vector<32x128xf32>
    %39 = arith.truncf %27 : vector<32x64xf32> to vector<32x64xbf16>
    %c2 = arith.constant 2 : index
    %c0_15 = arith.constant 0 : index
    %c0_16 = arith.constant 0 : index
    %40 = vector.load %arg2[%c2, %c0_15, %c0_16] : memref<3x64x128xbf16, #tpu.memory_space<vmem>>, vector<1x64x128xbf16>
    %41 = vector.shape_cast %40 : vector<1x64x128xbf16> to vector<64x128xbf16>
    %cst_17 = arith.constant dense<0.000000e+00> : vector<32x128xf32>
    %42 = tpu.matmul %39, %41, %cst_17 {dimension_numbers = #tpu.dot_dimension_numbers<[1], [0], [0], [1], [0, 0, 1, 1], [], []>} : vector<32x64xbf16>, vector<64x128xbf16>, vector<32x128xf32> -> vector<32x128xf32>
    %43 = arith.addf %38, %42 : vector<32x128xf32>
    %c0_18 = arith.constant 0 : index
    %c0_19 = arith.constant 0 : index
    %44 = vector.load %arg3[%c0_18, %c0_19] : memref<1x128xf32, #tpu.memory_space<vmem>>, vector<1x128xf32>
    %45 = vector.broadcast %44 : vector<1x128xf32> to vector<32x128xf32>
    %46 = arith.addf %43, %45 : vector<32x128xf32>
    %cst_20 = arith.constant 0.000000e+00 : f32
    %47 = vector.broadcast %cst_20 : f32 to vector<32x128xf32>
    %48 = arith.maximumf %46, %47 : vector<32x128xf32>
    %c0_21 = arith.constant 0 : index
    %c0_22 = arith.constant 0 : index
    %49 = vector.load %arg4[%c0_21, %c0_22] : memref<32x128xf32, #tpu.memory_space<vmem>>, vector<32x128xf32>
    tpu.vector_store %arg4[%c0_21, %c0_22], %48 {strides = array<i32>} : memref<32x128xf32, #tpu.memory_space<vmem>>, vector<32x128xf32>,
    return
  }
  func.func @transform_0(%arg0: i32) -> (i32, i32) {
    %c0_i32 = arith.constant 0 : i32
    %c0_i32_0 = arith.constant 0 : i32
    %c0_i32_1 = arith.constant 0 : i32
    return %c0_i32, %c0_i32_0 : i32, i32
  }
  func.func @transform_1(%arg0: i32) -> (i32, i32, i32) {
    %c0_i32 = arith.constant 0 : i32
    %c0_i32_0 = arith.constant 0 : i32
    %c0_i32_1 = arith.constant 0 : i32
    %c0_i32_2 = arith.constant 0 : i32
    return %c0_i32, %c0_i32_0, %c0_i32_1 : i32, i32, i32
  }
  func.func @transform_2(%arg0: i32) -> (i32, i32) {
    %c0_i32 = arith.constant 0 : i32
    %c0_i32_0 = arith.constant 0 : i32
    %c0_i32_1 = arith.constant 0 : i32
    return %c0_i32, %c0_i32_0 : i32, i32
  }
  func.func @transform_3(%arg0: i32) -> (i32, i32) {
    %c0_i32 = arith.constant 0 : i32
    %c0_i32_0 = arith.constant 0 : i32
    %c0_i32_1 = arith.constant 0 : i32
    return %c0_i32, %c0_i32_0 : i32, i32
  }
}

</mosaic_0001>

<bundles_post_ra>
// kernel: _conv2d_relu_pallas.1
= control target key start
LH: loop header
LB: loop body
LE: loop exit
PB: predicated region body
PF: predicated region fallthrough
CT: control target
= control target key end

     0   :  { %v19_v0 = vlaneseq  ;;  %vm151_vm4 = vcmask 523264   ;;  %s522_s1 = inlined_call_operand.vmem [shape: bf16[3,64,128], index: 1, kind: input, shape index: {}]   ;;  %s523_s0 = inlined_call_operand.vmem [shape: f32[32,64], index: 0, kind: input, shape index: {}]   ;;  %s524_s2 = inlined_call_operand.vmem [shape: f32[1,128], index: 2, kind: input, shape index: {}]   ;;  %s525_s3 = inlined_call_operand.vmem [shape: f32[32,128], index: 3, kind: output, shape index: {}]  }
   0x1   :  { %v387_v1 = vld [vmem:[%s522_s1 + $0x38] sm:$0xff]  ;;  %v386_v5 = vld [vmem:[%s522_s1 + $0x30] sm:$0xff]  ;;  %v15_v10 = vld [vmem:[%s523_s0] sm:$0xff] }
   0x2   :  { %v383_v2 = vld [vmem:[%s522_s1 + $0x18] sm:$0xff]  ;;  %v426_v4 = vshrl.u32 %v19_v0, 7  ;;  %162 = vmatpush.bf16.msra.mxu0 %v387_v1  ;;  %v382_v6 = vld [vmem:[%s522_s1 + $0x10] sm:$0xff]  ;;  %392 = vmatpush.bf16.msra.mxu3 %v387_v1  ;;  %v16_v11 = vld [vmem:[%s523_s0 + $0x8] sm:$0xff]  ;;  %v76_v13 = vrot.slane %v15_v10, 7  ;;  %v93_v22 = vrot.slane %v15_v10, 1 }
   0x3   :  { %v391_v3 = vld [vmem:[%s522_s1 + $0x58] sm:$0xff]  ;;  %211 = vmatpush.bf16.msra.mxu1 %v383_v2  ;;  %v390_v7 = vld [vmem:[%s522_s1 + $0x50] sm:$0xff]  ;;  %v94_v14 = vrot.slane %v16_v11, 1  ;;  %v385_v16 = vld [vmem:[%s522_s1 + $0x28] sm:$0xff]  ;;  %v77_v18 = vrot.slane %v16_v11, 7  ;;  %v116_v35 = vpack.c.bf16 %v16_v11, %v15_v10 }
   0x4   :  { %271 = vmatpush.bf16.msra.mxu2 %v391_v3  ;;  %v28_v8 = vand.u32 15, %v426_v4  ;;  %v21_v9 = vadd.s32 8, %v426_v4  ;;  %v18_v12 = vld [vmem:[%s523_s0 + $0x18] sm:$0xff]  ;;  %vm80_vm0 = vcmp.lt.s32.totalorder %v426_v4, 1  ;;  %v17_v15 = vld [vmem:[%s523_s0 + $0x10] sm:$0xff]  ;;  %v381_v17 = vld [vmem:[%s522_s1 + $0x8] sm:$0xff] }
   0x5   :  { %v79_v19 = vrot.slane %v18_v12, 7  ;;  %vm97_vm1 = vcmp.lt.s32.totalorder %v426_v4, 7  ;;  %v389_v21 = vld [vmem:[%s522_s1 + $0x48] sm:$0xff]  ;;  %v95_v24 = vrot.slane %v17_v15, 1  ;;  %v384_v28 = vld [vmem:[%s522_s1 + $0x20] sm:$0xff]  ;;  %v83_v30 = vsel %vm80_vm0, %v76_v13, %v77_v18 }
   0x6   :  { %163 = vmatpush.bf16.msra.mxu0 %v386_v5  ;;  %v35_v20 = vand.u32 15, %v21_v9  ;;  %393 = vmatpush.bf16.msra.mxu3 %v386_v5  ;;  %vm462_vm2 = vcmp.gt.s32.totalorder %v28_v8, 0  ;;  %v380_v29 = vld [vmem:[%s522_s1] sm:$0xff]  ;;  %v100_v33 = vsel %vm97_vm1, %v93_v22, %v94_v14  ;;  %v117_v38 = vpack.c.bf16 %v18_v12, %v17_v15 }
   0x7   :  { %212 = vmatpush.bf16.msra.mxu1 %v382_v6  ;;  %v84_v25 = vsel %vm80_vm0, %v79_v19, %v76_v13  ;;  %v99_v27 = vsel %vm97_vm1, %v94_v14, %v95_v24  ;;  %v388_v32 = vld [vmem:[%s522_s1 + $0x40] sm:$0xff]  ;;  %v22_v39 = vadd.s32 16, %v426_v4  ;;  %v23_v40 = vadd.s32 24, %v426_v4 }
   0x8   :  { %272 = vmatpush.bf16.msra.mxu2 %v390_v7  ;;  %vm468_vm3 = vcmp.lt.s32.totalorder %v35_v20, 15  ;;  %v85_v31 = vsel %vm462_vm2, %v84_v25, 0.0  ;;  %v78_v42 = vrot.slane %v17_v15, 7  ;;  %v96_v44 = vrot.slane %v18_v12, 1  ;;  %v396_v56 = vld [vmem:[%s524_s2] ss:$0 sm:$0xff] }
   0x9   :  { %v103_v34 = vsel %vm468_vm3, %v99_v27, 0.0  ;;  %v106_v36 = vpack.c.bf16 %v83_v30, %v85_v31  ;;  %v42_v41 = vand.u32 15, %v22_v39  ;;  %v49_v43 = vand.u32 15, %v23_v40 }
   0xa   :  { %164 = vmatpush.bf16.msra.mxu0 %v385_v16  ;;  %394 = vmatpush.bf16.msra.mxu3 %v385_v16  ;;  %v226_v37 = vpack.c.bf16 %v103_v34, %v100_v33  ;;  %v82_v45 = vsel %vm80_vm0, %v77_v18, %v78_v42  ;;  %v101_v46 = vsel %vm97_vm1, %v96_v44, %v93_v22 }
   0xb   :  { %213 = vmatpush.bf16.msra.mxu1 %v381_v17  ;;  %vm74_vm5 = vcmp.gt.s32.totalorder %v42_v41, 0  ;;  %vm92_vm6 = vcmp.lt.s32.totalorder %v49_v43, 15  ;;  %v81_v47 = vsel %vm80_vm0, %v78_v42, %v79_v19  ;;  %v98_v49 = vsel %vm97_vm1, %v95_v24, %v96_v44 }
   0xc   :  { %273 = vmatpush.bf16.msra.mxu2 %v389_v21  ;;  %v87_v48 = vsel %vm74_vm5, %v82_v45, 0.0  ;;  %v105_v50 = vsel %vm92_vm6, %v101_v46, 0.0 }
   0xd   :  { %v107_v51 = vpack.c.bf16 %v81_v47, %v87_v48  ;;  %v227_v52 = vpack.c.bf16 %v105_v50, %v98_v49 }
   0xe   :  { %165 = vmatpush.bf16.msra.mxu0 %v384_v28  ;;  %395 = vmatpush.bf16.msra.mxu3 %v384_v28 }
   0xf   :  { %214 = vmatpush.bf16.msra.mxu1 %v380_v29 }
  0x10   :  { %274 = vmatpush.bf16.msra.mxu2 %v388_v32 }
  0x11   :  { %334 = vmatmul.msk.bf16.vlgmr.msra.gmra.mxu0 %vm151_vm4, %v116_v35  ;;  %335 = vmatmul.msk.bf16.vlgmr.msra.gmra.mxu3 %vm151_vm4, %v117_v38 }
  0x12   :  { %352 = vmatmul.msk.bf16.vlgmr.msra.gmra.mxu1 %vm151_vm4, %v106_v36 }
  0x13   :  { %378 = vmatmul.msk.bf16.vlgmr.msra.gmra.mxu2 %vm151_vm4, %v226_v37 }
  0x22   :  { %353 = vmatmul.msk.bf16.gmra.mxu1 %vm151_vm4, %v107_v51 }
  0x23   :  { %379 = vmatmul.msk.bf16.gmra.mxu2 %vm151_vm4, %v227_v52 }
  0x8e   :  { %v167_v54 = vpop.f32.mrf.mxu0 }
  0x8f   :  { %v216_v53 = vpop.f32.mrf.mxu1 }
  0x90   :  { %v217_v55 = vadd.f32 %v216_v53, %v167_v54 }
  0x94   :  { %v172_v4 = vpop.f32.mrf.mxu3 }
  0x96   :  { %v276_v57 = vpop.f32.mrf.mxu2  ;;  %v169_v61 = vpop.f32.mrf.mxu0 }
  0x97   :  { %v286_v58 = vadd.f32 %v276_v57, %v217_v55  ;;  %v218_v59 = vpop.f32.mrf.mxu1 }
  0x98   :  { %v219_v63 = vadd.f32 %v218_v59, %v169_v61 }
  0x99   :  { %v294_v60 = vadd.f32 %v396_v56, %v286_v58 }
  0x9b   :  { %v298_v62 = vmax.f32 %v294_v60, 0.0 }
  0x9c   :  { %v174_v12 = vpop.f32.mrf.mxu3 }
  0x9d   :  { %302 = vst [vmem:[%s525_s3] sm:$0xff] %v298_v62 }
  0x9e   :  { %v278_v0 = vpop.f32.mrf.mxu2 }
  0x9f   :  { %v287_v1 = vadd.f32 %v278_v0, %v219_v63  ;;  %v221_v2 = vpop.f32.mrf.mxu1 }
  0xa0   :  { %v222_v6 = vadd.f32 %v221_v2, %v172_v4 }
  0xa1   :  { %v295_v3 = vadd.f32 %v396_v56, %v287_v1 }
  0xa3   :  { %v299_v5 = vmax.f32 %v295_v3, 0.0 }
  0xa5   :  { %303 = vst [vmem:[%s525_s3 + $0x8] sm:$0xff] %v299_v5 }
  0xa6   :  { %v281_v7 = vpop.f32.mrf.mxu2 }
  0xa7   :  { %v288_v8 = vadd.f32 %v281_v7, %v222_v6  ;;  %v223_v10 = vpop.f32.mrf.mxu1 }
  0xa8   :  { %v224_v13 = vadd.f32 %v223_v10, %v174_v12 }
  0xa9   :  { %v296_v9 = vadd.f32 %v396_v56, %v288_v8 }
  0xab   :  { %v300_v11 = vmax.f32 %v296_v9, 0.0 }
  0xad   :  { %304 = vst [vmem:[%s525_s3 + $0x10] sm:$0xff] %v300_v11 }
  0xae   :  { %v283_v14 = vpop.f32.mrf.mxu2 }
  0xaf   :  { %v289_v15 = vadd.f32 %v283_v14, %v224_v13 }
  0xb1   :  { %v297_v16 = vadd.f32 %v396_v56, %v289_v15 }
  0xb3   :  { %v301_v17 = vmax.f32 %v297_v16, 0.0 }
  0xb5   :  { %305 = vst [vmem:[%s525_s3 + $0x18] sm:$0xff] %v301_v17 }

</bundles_post_ra>
